<compile_context>
chip_gen: v7x
topology: tpu7x:2x2x1
jax: 0.10.0
libtpu: 0.0.40
codegen_flags: <defaults>
</compile_context>

<pallas_src>
import numpy as np
import jax
import jax.numpy as jnp
from jax.experimental import pallas as pl
from jax.experimental.pallas import tpu as pltpu


# ---------------------------------------------------------------------------
# Deterministic parameter init (mirrors LearnableFPActivation(precision_bits=8))
# ---------------------------------------------------------------------------
def make_fp8_values():
    init_vals = [0.0, 0.25, 0.5, 0.75, 1.0, 1.5, 2.0, 3.0, 4.0, 6.0, 8.0, 12.0,
                 16.0, 24.0, 32.0, 48.0, -0.25, -0.5, -0.75, -1.0, -1.5, -2.0,
                 -3.0, -4.0, -6.0, -8.0, -12.0, -16.0, -24.0, -32.0, -48.0, -64.0]
    vals = sorted(set(init_vals + [float(i) for i in range(-128, 128)]))
    init_vals = vals[:256]
    vals = sorted(set(init_vals))          # 256 unique sorted values
    return jnp.asarray(vals, dtype=jnp.float32)


def _round_up(n, m):
    return ((n + m - 1) // m) * m


def _prune_codebook(fp_values):
    """Sort the codebook and keep exactly the entries reachable for inputs in [0, 1].

    For sorted vals and p in [0, 1]:
      low  = max{v : v <  p}  has index in [count(v<0)-1, count(v<1)-1]
      high = min{v : v >= p}  has index in [count(v<0),   count(v<1)]
    so slicing to [max(count(v<0)-1, 0), min(count(v<1), N-1)] is exact.
    The learnable parameter is consumed at trace time (must be concrete).
    """
    v = np.sort(np.asarray(jax.device_get(fp_values), dtype=np.float32))
    n = v.shape[0]
    a = int(np.searchsorted(v, np.float32(0.0), side="left"))
    b = int(np.searchsorted(v, np.float32(1.0), side="left"))
    lo = max(a - 1, 0)
    hi = min(b, n - 1)
    return tuple(float(x) for x in v[lo:hi + 1])


# ---------------------------------------------------------------------------
# In-kernel nearest-codebook quantization (exact STEQuantize semantics):
#   low = max{v < p} (-inf if none), high = min{v >= p} (+inf if none),
#   out = low if |p-low| <= |p-high| else high.
# The codebook is a short tuple of compile-time scalars (pruned, ascending).
# ---------------------------------------------------------------------------
def _quantize(p, codebook):
    low = jnp.full_like(p, -jnp.inf)
    high = jnp.full_like(p, jnp.inf)
    for v in codebook:                                   # ~6 scalar constants
        v = jnp.float32(v)
        below = v < p
        low = jnp.where(below, v, low)                   # ascending -> ends as max{v < p}
        high = jnp.where(below, high, jnp.minimum(high, v))  # ends as min{v >= p}
    return jnp.where(jnp.abs(p - low) <= jnp.abs(p - high), low, high)


def _make_packed_kernel(w, codebook):
    """Lane-dense kernel: 128 // w softmax rows packed per 128-lane vector row."""
    shifts = []
    s = 1
    while s < w:
        shifts.append(s)
        s *= 2

    def kernel(x_ref, o_ref):
        x = x_ref[...]                                            # (tr, 128) f32

        # XOR-butterfly partner masks, derived by rolling the lane iota with the
        # same op/shift as the data, so the kernel is correct independent of the
        # rotation direction convention of pltpu.roll.
        lane = jax.lax.broadcasted_iota(jnp.int32, (1, 128), 1)
        lane_f = lane.astype(jnp.float32)
        use_fwd = []
        for sh in shifts:
            partner_f = (lane ^ sh).astype(jnp.float32)
            use_fwd.append(pltpu.roll(lane_f, shift=sh, axis=1) == partner_f)

        def group_allreduce(v, combine):
            # all-reduce within each aligned group of w lanes (hypercube butterfly)
            for sh, mask in zip(shifts, use_fwd):
                fwd = pltpu.roll(v, shift=sh, axis=1)
                bwd = pltpu.roll(v, shift=128 - sh, axis=1)
                v = combine(v, jnp.where(mask, fwd, bwd))
            return v

        m = group_allreduce(x, jnp.maximum)                       # per-group max
        e = jnp.exp(x - m)
        denom = group_allreduce(e, jnp.add)                       # per-group sum
        p = e * pl.reciprocal(denom, approx=False)                # EUP, exact
        o_ref[...] = _quantize(p, codebook)

    return kernel


def _make_generic_kernel(codebook):
    """Fallback: softmax axis mapped to lanes (lane-dense when W >= 128)."""
    def kernel(x_ref, o_ref):
        x = x_ref[...]                                            # (tr, W) f32
        m = jnp.max(x, axis=-1, keepdims=True)
        e = jnp.exp(x - m)
        denom = jnp.sum(e, axis=-1, keepdims=True)
        p = e * pl.reciprocal(denom, approx=False)
        o_ref[...] = _quantize(p, codebook)
    return kernel


# ---------------------------------------------------------------------------
# Wrapper
# ---------------------------------------------------------------------------
def fp8_softmax(x, fp_values, *, block_rows=2048):
    """FP8Softmax.forward: softmax over the last axis, then nearest-codebook quantization."""
    orig_shape = x.shape
    w = int(orig_shape[-1])
    r = int(x.size) // w
    codebook = _prune_codebook(fp_values)                # exact range-prune, trace-time
    x2d = x.reshape(r, w).astype(jnp.float32)

    cparams = pltpu.CompilerParams(
        dimension_semantics=("parallel",),
        vmem_limit_bytes=32 * 1024 * 1024,
    )

    packed = (w <= 128) and (w & (w - 1) == 0)           # power of two -> pack into lanes
    if packed:
        g = 128 // w                                     # softmax rows per 128-lane row
        rp = _round_up(pl.cdiv(r, g), 8)                 # packed rows, multiple of 8
        if rp > block_rows:
            rp = _round_up(rp, block_rows)
            tr = block_rows                              # ~1 MiB input per grid step
        else:
            tr = rp
        r_pad = rp * g
        if r_pad != r:
            x2d = jnp.pad(x2d, ((0, r_pad - r), (0, 0)))  # dummy rows, sliced off below
        xp = x2d.reshape(rp, 128)                        # layout-identical, lane-dense

        out = pl.pallas_call(
            _make_packed_kernel(w, codebook),
            out_shape=jax.ShapeDtypeStruct((rp, 128), jnp.float32),
            grid_spec=pltpu.PrefetchScalarGridSpec(
                num_scalar_prefetch=0,
                grid=(rp // tr,),
                in_specs=[pl.BlockSpec((tr, 128), lambda i: (i, 0))],
                out_specs=pl.BlockSpec((tr, 128), lambda i: (i, 0)),
            ),
            compiler_params=cparams,
        )(xp)
        out = out.reshape(r_pad, w)[:r]
    else:
        # generic path: ~2 MiB of input per grid step, rows tiled in multiples of 8
        tr_target = max(8, min(4096, ((2 << 20) // (4 * w)) // 8 * 8))
        if r <= tr_target:
            rp = _round_up(r, 8)
            tr = rp
        else:
            rp = _round_up(r, tr_target)
            tr = tr_target
        if rp != r:
            x2d = jnp.pad(x2d, ((0, rp - r), (0, 0)))

        out = pl.pallas_call(
            _make_generic_kernel(codebook),
            out_shape=jax.ShapeDtypeStruct((rp, w), jnp.float32),
            grid_spec=pltpu.PrefetchScalarGridSpec(
                num_scalar_prefetch=0,
                grid=(rp // tr,),
                in_specs=[pl.BlockSpec((tr, w), lambda i: (i, 0))],
                out_specs=pl.BlockSpec((tr, w), lambda i: (i, 0)),
            ),
            compiler_params=cparams,
        )(x2d)
        out = out[:r]

    return out.reshape(orig_shape)


if __name__ == "__main__":
    fp_values = make_fp8_values()                        # the nn.Parameter (init values)

    key = jax.random.PRNGKey(0)
    x = jax.random.normal(key, (2, 4, 16, 16), dtype=jnp.float32)

    y = jax.block_until_ready(fp8_softmax(x, fp_values))
    assert y.shape == x.shape and y.dtype == jnp.float32

    # sanity 1: every output element is an exact codebook member
    vals_sorted = jnp.sort(fp_values.astype(jnp.float32))
    min_dist = jnp.min(jnp.abs(y.reshape(-1, 1) - vals_sorted.reshape(1, -1)), axis=-1)
    assert float(jnp.max(min_dist)) == 0.0, "output contains non-codebook values"

    # sanity 2: matches the PyTorch STEQuantize(F.softmax(x)) semantics
    p_ref = jax.nn.softmax(x, axis=-1)
    idx = jnp.clip(jnp.searchsorted(vals_sorted, p_ref), 1, vals_sorted.shape[0] - 1)
    low = vals_sorted[idx - 1]
    high = vals_sorted[idx]
    y_ref = jnp.where(jnp.abs(p_ref - low) <= jnp.abs(p_ref - high), low, high)
    mismatch = y != y_ref
    near_tie = jnp.abs(p_ref - 0.5 * (low + high)) < 1e-5   # ulp-level softmax diffs may flip exact ties
    assert bool(jnp.all(jnp.logical_or(jnp.logical_not(mismatch), near_tie))), \
        "kernel disagrees with reference"

    print("KERNEL_OK")
</pallas_src>

<mosaic_0001>
module attributes {stable_mosaic.version = 11 : i64} {
  func.func @kernel(%arg0: i32, %arg1: memref<16x128xf32, #tpu.memory_space<vmem>>, %arg2: memref<16x128xf32, #tpu.memory_space<vmem>>) attributes {dimension_semantics = [#tpu.dimension_semantics<parallel>], iteration_bounds = array<i64: 1>, scalar_prefetch = 0 : i64, scratch_operands = 0 : i64, tpu.core_type = #tpu.core_type<tc>, window_params = [{transform_indices = @transform_0, window_bounds = array<i64: 16, 128>}, {transform_indices = @transform_1, window_bounds = array<i64: 16, 128>}]} {
    %c0 = arith.constant 0 : index
    %c0_0 = arith.constant 0 : index
    %0 = vector.load %arg1[%c0, %c0_0] : memref<16x128xf32, #tpu.memory_space<vmem>>, vector<16x128xf32>
    %1 = tpu.iota {dimensions = array<i32: 1>} : vector<1x128xi32>
    %2 = arith.sitofp %1 : vector<1x128xi32> to vector<1x128xf32>
    %c1_i32 = arith.constant 1 : i32
    %3 = vector.broadcast %c1_i32 : i32 to vector<1x128xi32>
    %4 = arith.xori %1, %3 : vector<1x128xi32>
    %5 = arith.sitofp %4 : vector<1x128xi32> to vector<1x128xf32>
    %c1_i32_1 = arith.constant 1 : i32
    %6 = tpu.dynamic_rotate %2 by %c1_i32_1 dim 1 : vector<1x128xf32>, i32 -> vector<1x128xf32>
    %7 = arith.cmpf oeq, %6, %5 : vector<1x128xf32>
    %c2_i32 = arith.constant 2 : i32
    %8 = vector.broadcast %c2_i32 : i32 to vector<1x128xi32>
    %9 = arith.xori %1, %8 : vector<1x128xi32>
    %10 = arith.sitofp %9 : vector<1x128xi32> to vector<1x128xf32>
    %c2_i32_2 = arith.constant 2 : i32
    %11 = tpu.dynamic_rotate %2 by %c2_i32_2 dim 1 : vector<1x128xf32>, i32 -> vector<1x128xf32>
    %12 = arith.cmpf oeq, %11, %10 : vector<1x128xf32>
    %c4_i32 = arith.constant 4 : i32
    %13 = vector.broadcast %c4_i32 : i32 to vector<1x128xi32>
    %14 = arith.xori %1, %13 : vector<1x128xi32>
    %15 = arith.sitofp %14 : vector<1x128xi32> to vector<1x128xf32>
    %c4_i32_3 = arith.constant 4 : i32
    %16 = tpu.dynamic_rotate %2 by %c4_i32_3 dim 1 : vector<1x128xf32>, i32 -> vector<1x128xf32>
    %17 = arith.cmpf oeq, %16, %15 : vector<1x128xf32>
    %c8_i32 = arith.constant 8 : i32
    %18 = vector.broadcast %c8_i32 : i32 to vector<1x128xi32>
    %19 = arith.xori %1, %18 : vector<1x128xi32>
    %20 = arith.sitofp %19 : vector<1x128xi32> to vector<1x128xf32>
    %c8_i32_4 = arith.constant 8 : i32
    %21 = tpu.dynamic_rotate %2 by %c8_i32_4 dim 1 : vector<1x128xf32>, i32 -> vector<1x128xf32>
    %22 = arith.cmpf oeq, %21, %20 : vector<1x128xf32>
    %c1_i32_5 = arith.constant 1 : i32
    %23 = tpu.dynamic_rotate %0 by %c1_i32_5 dim 1 : vector<16x128xf32>, i32 -> vector<16x128xf32>
    %c127_i32 = arith.constant 127 : i32
    %24 = tpu.dynamic_rotate %0 by %c127_i32 dim 1 : vector<16x128xf32>, i32 -> vector<16x128xf32>
    %25 = vector.shape_cast %7 : vector<1x128xi1> to vector<1x128xi1>
    %26 = vector.broadcast %25 : vector<1x128xi1> to vector<16x128xi1>
    %27 = arith.select %26, %23, %24 : vector<16x128xi1>, vector<16x128xf32>
    %28 = arith.maximumf %0, %27 : vector<16x128xf32>
    %c2_i32_6 = arith.constant 2 : i32
    %29 = tpu.dynamic_rotate %28 by %c2_i32_6 dim 1 : vector<16x128xf32>, i32 -> vector<16x128xf32>
    %c126_i32 = arith.constant 126 : i32
    %30 = tpu.dynamic_rotate %28 by %c126_i32 dim 1 : vector<16x128xf32>, i32 -> vector<16x128xf32>
    %31 = vector.shape_cast %12 : vector<1x128xi1> to vector<1x128xi1>
    %32 = vector.broadcast %31 : vector<1x128xi1> to vector<16x128xi1>
    %33 = arith.select %32, %29, %30 : vector<16x128xi1>, vector<16x128xf32>
    %34 = arith.maximumf %28, %33 : vector<16x128xf32>
    %c4_i32_7 = arith.constant 4 : i32
    %35 = tpu.dynamic_rotate %34 by %c4_i32_7 dim 1 : vector<16x128xf32>, i32 -> vector<16x128xf32>
    %c124_i32 = arith.constant 124 : i32
    %36 = tpu.dynamic_rotate %34 by %c124_i32 dim 1 : vector<16x128xf32>, i32 -> vector<16x128xf32>
    %37 = vector.shape_cast %17 : vector<1x128xi1> to vector<1x128xi1>
    %38 = vector.broadcast %37 : vector<1x128xi1> to vector<16x128xi1>
    %39 = arith.select %38, %35, %36 : vector<16x128xi1>, vector<16x128xf32>
    %40 = arith.maximumf %34, %39 : vector<16x128xf32>
    %c8_i32_8 = arith.constant 8 : i32
    %41 = tpu.dynamic_rotate %40 by %c8_i32_8 dim 1 : vector<16x128xf32>, i32 -> vector<16x128xf32>
    %c120_i32 = arith.constant 120 : i32
    %42 = tpu.dynamic_rotate %40 by %c120_i32 dim 1 : vector<16x128xf32>, i32 -> vector<16x128xf32>
    %43 = vector.shape_cast %22 : vector<1x128xi1> to vector<1x128xi1>
    %44 = vector.broadcast %43 : vector<1x128xi1> to vector<16x128xi1>
    %45 = arith.select %44, %41, %42 : vector<16x128xi1>, vector<16x128xf32>
    %46 = arith.maximumf %40, %45 : vector<16x128xf32>
    %47 = arith.subf %0, %46 : vector<16x128xf32>
    %48 = math.exp %47 : vector<16x128xf32>
    %c1_i32_9 = arith.constant 1 : i32
    %49 = tpu.dynamic_rotate %48 by %c1_i32_9 dim 1 : vector<16x128xf32>, i32 -> vector<16x128xf32>
    %c127_i32_10 = arith.constant 127 : i32
    %50 = tpu.dynamic_rotate %48 by %c127_i32_10 dim 1 : vector<16x128xf32>, i32 -> vector<16x128xf32>
    %51 = vector.shape_cast %7 : vector<1x128xi1> to vector<1x128xi1>
    %52 = vector.broadcast %51 : vector<1x128xi1> to vector<16x128xi1>
    %53 = arith.select %52, %49, %50 : vector<16x128xi1>, vector<16x128xf32>
    %54 = arith.addf %48, %53 : vector<16x128xf32>
    %c2_i32_11 = arith.constant 2 : i32
    %55 = tpu.dynamic_rotate %54 by %c2_i32_11 dim 1 : vector<16x128xf32>, i32 -> vector<16x128xf32>
    %c126_i32_12 = arith.constant 126 : i32
    %56 = tpu.dynamic_rotate %54 by %c126_i32_12 dim 1 : vector<16x128xf32>, i32 -> vector<16x128xf32>
    %57 = vector.shape_cast %12 : vector<1x128xi1> to vector<1x128xi1>
    %58 = vector.broadcast %57 : vector<1x128xi1> to vector<16x128xi1>
    %59 = arith.select %58, %55, %56 : vector<16x128xi1>, vector<16x128xf32>
    %60 = arith.addf %54, %59 : vector<16x128xf32>
    %c4_i32_13 = arith.constant 4 : i32
    %61 = tpu.dynamic_rotate %60 by %c4_i32_13 dim 1 : vector<16x128xf32>, i32 -> vector<16x128xf32>
    %c124_i32_14 = arith.constant 124 : i32
    %62 = tpu.dynamic_rotate %60 by %c124_i32_14 dim 1 : vector<16x128xf32>, i32 -> vector<16x128xf32>
    %63 = vector.shape_cast %17 : vector<1x128xi1> to vector<1x128xi1>
    %64 = vector.broadcast %63 : vector<1x128xi1> to vector<16x128xi1>
    %65 = arith.select %64, %61, %62 : vector<16x128xi1>, vector<16x128xf32>
    %66 = arith.addf %60, %65 : vector<16x128xf32>
    %c8_i32_15 = arith.constant 8 : i32
    %67 = tpu.dynamic_rotate %66 by %c8_i32_15 dim 1 : vector<16x128xf32>, i32 -> vector<16x128xf32>
    %c120_i32_16 = arith.constant 120 : i32
    %68 = tpu.dynamic_rotate %66 by %c120_i32_16 dim 1 : vector<16x128xf32>, i32 -> vector<16x128xf32>
    %69 = vector.shape_cast %22 : vector<1x128xi1> to vector<1x128xi1>
    %70 = vector.broadcast %69 : vector<1x128xi1> to vector<16x128xi1>
    %71 = arith.select %70, %67, %68 : vector<16x128xi1>, vector<16x128xf32>
    %72 = arith.addf %66, %71 : vector<16x128xf32>
    %73 = tpu.reciprocal %72 : vector<16x128xf32> -> vector<16x128xf32>
    %74 = arith.mulf %48, %73 : vector<16x128xf32>
    %cst = arith.constant 0xFF800000 : f32
    %75 = vector.broadcast %cst : f32 to vector<16x128xf32>
    %cst_17 = arith.constant 0x7F800000 : f32
    %76 = vector.broadcast %cst_17 : f32 to vector<16x128xf32>
    %cst_18 = arith.constant -2.500000e-01 : f32
    %77 = vector.broadcast %cst_18 : f32 to vector<16x128xf32>
    %78 = arith.cmpf olt, %77, %74 : vector<16x128xf32>
    %cst_19 = arith.constant -2.500000e-01 : f32
    %79 = vector.broadcast %cst_19 : f32 to vector<16x128xf32>
    %80 = arith.select %78, %79, %75 : vector<16x128xi1>, vector<16x128xf32>
    %cst_20 = arith.constant -2.500000e-01 : f32
    %81 = vector.broadcast %cst_20 : f32 to vector<16x128xf32>
    %82 = arith.minimumf %76, %81 : vector<16x128xf32>
    %83 = arith.select %78, %76, %82 : vector<16x128xi1>, vector<16x128xf32>
    %cst_21 = arith.constant 0.000000e+00 : f32
    %84 = vector.broadcast %cst_21 : f32 to vector<16x128xf32>
    %85 = arith.cmpf olt, %84, %74 : vector<16x128xf32>
    %cst_22 = arith.constant 0.000000e+00 : f32
    %86 = vector.broadcast %cst_22 : f32 to vector<16x128xf32>
    %87 = arith.select %85, %86, %80 : vector<16x128xi1>, vector<16x128xf32>
    %cst_23 = arith.constant 0.000000e+00 : f32
    %88 = vector.broadcast %cst_23 : f32 to vector<16x128xf32>
    %89 = arith.minimumf %83, %88 : vector<16x128xf32>
    %90 = arith.select %85, %83, %89 : vector<16x128xi1>, vector<16x128xf32>
    %cst_24 = arith.constant 2.500000e-01 : f32
    %91 = vector.broadcast %cst_24 : f32 to vector<16x128xf32>
    %92 = arith.cmpf olt, %91, %74 : vector<16x128xf32>
    %cst_25 = arith.constant 2.500000e-01 : f32
    %93 = vector.broadcast %cst_25 : f32 to vector<16x128xf32>
    %94 = arith.select %92, %93, %87 : vector<16x128xi1>, vector<16x128xf32>
    %cst_26 = arith.constant 2.500000e-01 : f32
    %95 = vector.broadcast %cst_26 : f32 to vector<16x128xf32>
    %96 = arith.minimumf %90, %95 : vector<16x128xf32>
    %97 = arith.select %92, %90, %96 : vector<16x128xi1>, vector<16x128xf32>
    %cst_27 = arith.constant 5.000000e-01 : f32
    %98 = vector.broadcast %cst_27 : f32 to vector<16x128xf32>
    %99 = arith.cmpf olt, %98, %74 : vector<16x128xf32>
    %cst_28 = arith.constant 5.000000e-01 : f32
    %100 = vector.broadcast %cst_28 : f32 to vector<16x128xf32>
    %101 = arith.select %99, %100, %94 : vector<16x128xi1>, vector<16x128xf32>
    %cst_29 = arith.constant 5.000000e-01 : f32
    %102 = vector.broadcast %cst_29 : f32 to vector<16x128xf32>
    %103 = arith.minimumf %97, %102 : vector<16x128xf32>
    %104 = arith.select %99, %97, %103 : vector<16x128xi1>, vector<16x128xf32>
    %cst_30 = arith.constant 7.500000e-01 : f32
    %105 = vector.broadcast %cst_30 : f32 to vector<16x128xf32>
    %106 = arith.cmpf olt, %105, %74 : vector<16x128xf32>
    %cst_31 = arith.constant 7.500000e-01 : f32
    %107 = vector.broadcast %cst_31 : f32 to vector<16x128xf32>
    %108 = arith.select %106, %107, %101 : vector<16x128xi1>, vector<16x128xf32>
    %cst_32 = arith.constant 7.500000e-01 : f32
    %109 = vector.broadcast %cst_32 : f32 to vector<16x128xf32>
    %110 = arith.minimumf %104, %109 : vector<16x128xf32>
    %111 = arith.select %106, %104, %110 : vector<16x128xi1>, vector<16x128xf32>
    %cst_33 = arith.constant 1.000000e+00 : f32
    %112 = vector.broadcast %cst_33 : f32 to vector<16x128xf32>
    %113 = arith.cmpf olt, %112, %74 : vector<16x128xf32>
    %cst_34 = arith.constant 1.000000e+00 : f32
    %114 = vector.broadcast %cst_34 : f32 to vector<16x128xf32>
    %115 = arith.select %113, %114, %108 : vector<16x128xi1>, vector<16x128xf32>
    %cst_35 = arith.constant 1.000000e+00 : f32
    %116 = vector.broadcast %cst_35 : f32 to vector<16x128xf32>
    %117 = arith.minimumf %111, %116 : vector<16x128xf32>
    %118 = arith.select %113, %111, %117 : vector<16x128xi1>, vector<16x128xf32>
    %119 = arith.subf %74, %115 : vector<16x128xf32>
    %120 = math.absf %119 : vector<16x128xf32>
    %121 = arith.subf %74, %118 : vector<16x128xf32>
    %122 = math.absf %121 : vector<16x128xf32>
    %123 = arith.cmpf ole, %120, %122 : vector<16x128xf32>
    %124 = arith.select %123, %115, %118 : vector<16x128xi1>, vector<16x128xf32>
    %c0_36 = arith.constant 0 : index
    %c0_37 = arith.constant 0 : index
    %125 = vector.load %arg2[%c0_36, %c0_37] : memref<16x128xf32, #tpu.memory_space<vmem>>, vector<16x128xf32>
    tpu.vector_store %arg2[%c0_36, %c0_37], %124 {strides = array<i32>} : memref<16x128xf32, #tpu.memory_space<vmem>>, vector<16x128xf32>,
    return
  }
  func.func @transform_0(%arg0: i32) -> (i32, i32) {
    %c0_i32 = arith.constant 0 : i32
    %c0_i32_0 = arith.constant 0 : i32
    return %arg0, %c0_i32 : i32, i32
  }
  func.func @transform_1(%arg0: i32) -> (i32, i32) {
    %c0_i32 = arith.constant 0 : i32
    %c0_i32_0 = arith.constant 0 : i32
    return %arg0, %c0_i32 : i32, i32
  }
}

</mosaic_0001>

<bundles_post_ra>
// kernel: tpu_custom_call.1
= control target key start
LH: loop header
LB: loop body
LE: loop exit
PB: predicated region body
PF: predicated region fallthrough
CT: control target
= control target key end

     0   :  { %6 = vsyncpa [#allocation3], 0  ;;  %s506_s0 = inlined_call_operand.hbm [shape: f32[16,128], index: 0, kind: input, shape index: {}]   ;;  %s507_s1 = inlined_call_operand.hbm [shape: f32[16,128], index: 1, kind: output, shape index: {}]  }
   0x1   :  { %7 = vsyncpa [#allocation4], 0  ;;  %s337_s6 = smov [#allocation2]   ;;  %s289_s10 = scalar_lea.hbm %s506_s0, 256 }
   0x2   :  { %s13_s7 = sshll.u32 %s337_s6, 4  ;;  %p290_p0 = scmp.ne.s32.totalorder %s506_s0, %s289_s10  ;;  %s14_s7 = int_to_ptr.vmem [resolvable:$true] %s13_s7 }
   0x3   :  { %p293_p1 = scmp.lt.u32.totalorder %s289_s10, %s506_s0 }
   0x5   :  { %p295_p2 = pnand %p293_p1, %p290_p0 }
   0x7   :  { %298 = shalt.err (!%p295_p2)
}
   0x8   :  { %s299_s15 = scalar_lea.vmem %s14_s7, 256  ;;  %p304_p4 = scmp.lt.s32.totalorder %s14_s7, %s14_s7 }
   0x9   :  { %p300_p3 = scmp.ne.s32.totalorder %s14_s7, %s299_s15  ;;  %p305_p5 = scmp.lt.s32.totalorder %s299_s15, %s299_s15 }
   0xb   :  { %p306_p6 = por %p305_p5, %p304_p4 }
   0xd   :  { %p307_p7 = pnand %p306_p6, %p300_p3 }
   0xf   :  { %310 = shalt.err (!%p307_p7)
}
  0x10   :  { %s338_s16 = smov 128   ;;  %s339_s17 = smov 8  }
  0x11   :  { %19 = dma.hbm_to_vmem [thread:$0]  %s506_s0, 256, %s14_s7, [#allocation3], %s338_s16, %s338_s16, %s339_s17  }
  0x12   :  { %333 = dma.done.wait [#allocation3], 256  }
  0x13   :  { %334 = vsyncadd [#allocation3], 4294967040  ;;  %v25_v0 = vlaneseq  ;;  %s340_s20 = smov 1   ;;  %v380_v3 = vld [vmem:[#allocation2 + $0x8] sm:$0xff]  ;;  %v382_v4 = vld [vmem:[#allocation2] sm:$0xff]  ;;  %s341_s0 = smov 127  }
  0x14   :  { %50 = vrot.lane.b32.xlu1 %v380_v3, %s340_s20  ;;  %s342_s21 = smov 2   ;;  %v343_v10 = vmov 0   ;;  %s344_s22 = smov 126   ;;  %v348_v42 = vmov -inf  }
  0x15   :  { %v376_v1 = vand.u32 127, %v25_v0  ;;  %v58_v6 = vshrl.u32 %v25_v0, 7  ;;  %s345_s23 = smov 4   ;;  %s346_s24 = smov 124  }
  0x16   :  { %s347_s25 = smov 120   ;;  %s350_s26 = smov [#allocation5]  }
  0x17   :  { %v27_v2 = vcvt.s32.f32 %v376_v1  ;;  %v28_v5 = vxor.u32 1, %v376_v1  ;;  %v394_v8 = vsub.s32 0, %v58_v6  ;;  %v33_v22 = vxor.u32 2, %v376_v1  ;;  %s243_s27 = sshll.u32 %s350_s26, 4  ;;  %s244_s27 = int_to_ptr.vmem [resolvable:$true] %s243_s27 }
  0x18   :  { %52 = vrot.lane.b32.xlu1 %v382_v4, %s341_s0  ;;  %v38_v36 = vxor.u32 4, %v376_v1  ;;  %v43_v50 = vxor.u32 8, %v376_v1  ;;  %s311_s28 = scalar_lea.vmem %s244_s27, 256  ;;  %p316_p9 = scmp.lt.s32.totalorder %s244_s27, %s244_s27 }
  0x19   :  { %30 = vrot.lane.b32.xlu0 %v27_v2, %s340_s20  ;;  %v29_v7 = vcvt.s32.f32 %v28_v5  ;;  %v34_v23 = vcvt.s32.f32 %v33_v22  ;;  %p312_p8 = scmp.ne.s32.totalorder %s244_s27, %s311_s28  ;;  %p317_p10 = scmp.lt.s32.totalorder %s311_s28, %s311_s28 }
  0x1a   :  { %v39_v37 = vcvt.s32.f32 %v38_v36  ;;  %v44_v51 = vcvt.s32.f32 %v43_v50 }
  0x1b   :  { %p318_p11 = por %p317_p10, %p316_p9 }
  0x1c   :  { %35 = vrot.lane.b32.xlu1 %v27_v2, %s342_s21 }
  0x1d   :  { %48 = vrot.lane.b32.xlu0 %v382_v4, %s340_s20  ;;  %p319_p12 = pnand %p318_p11, %p312_p8 }
  0x21   :  { %54 = vrot.lane.b32.xlu0 %v380_v3, %s341_s0 }
  0x86   :  { %v51_v12 = vpop.permute.xlu1 %50 }
  0x8a   :  { %v53_v16 = vpop.permute.xlu1 %52 }
  0x8b   :  { %v31_v9 = vpop.permute.xlu0 %30 }
  0x8c   :  { %vm32_vm0 = vcmp.eq.f32.partialorder %v31_v9, %v29_v7 }
  0x8d   :  { %v56_v11 = vsel %vm32_vm0, 1, %v343_v10 }
  0x8e   :  { %v60_v13 = vrot.slane %v56_v11, %v394_v8  ;;  %v36_v24 = vpop.permute.xlu1 %35 }
  0x8f   :  { %v49_v14 = vpop.permute.xlu0 %48  ;;  %vm37_vm2 = vcmp.eq.f32.partialorder %v36_v24, %v34_v23 }
  0x90   :  { %vm398_vm1 = vcmp.eq.s32.totalorder %v60_v13, 1  ;;  %v74_v25 = vsel %vm37_vm2, 1, %v343_v10 }
  0x91   :  { %v62_v17 = vsel %vm398_vm1, %v49_v14, %v53_v16  ;;  %v78_v26 = vrot.slane %v74_v25, %v394_v8 }
  0x92   :  { %v64_v18 = vmax.f32 %v382_v4, %v62_v17 }
  0x93   :  { %v55_v19 = vpop.permute.xlu0 %54  ;;  %vm416_vm3 = vcmp.eq.s32.totalorder %v78_v26, 1 }
  0x94   :  { %v63_v20 = vsel %vm398_vm1, %v51_v12, %v55_v19  ;;  %66 = vrot.lane.b32.xlu0 %v64_v18, %s342_s21 }
  0x95   :  { %v65_v21 = vmax.f32 %v380_v3, %v63_v20 }
  0x97   :  { %68 = vrot.lane.b32.xlu1 %v65_v21, %s342_s21 }
  0x98   :  { %70 = vrot.lane.b32.xlu0 %v64_v18, %s344_s22 }
  0x9b   :  { %72 = vrot.lane.b32.xlu1 %v65_v21, %s344_s22 }
  0x9c   :  { %40 = vrot.lane.b32.xlu0 %v27_v2, %s345_s23 }
 0x106   :  { %v67_v27 = vpop.permute.xlu0 %66 }
 0x109   :  { %v69_v29 = vpop.permute.xlu1 %68 }
 0x10a   :  { %v71_v30 = vpop.permute.xlu0 %70 }
 0x10b   :  { %v80_v31 = vsel %vm416_vm3, %v67_v27, %v71_v30 }
 0x10c   :  { %v82_v32 = vmax.f32 %v64_v18, %v80_v31 }
 0x10d   :  { %v73_v33 = vpop.permute.xlu1 %72 }
 0x10e   :  { %v81_v34 = vsel %vm416_vm3, %v69_v29, %v73_v33  ;;  %84 = vrot.lane.b32.xlu1 %v82_v32, %s345_s23  ;;  %v41_v38 = vpop.permute.xlu0 %40 }
 0x10f   :  { %v83_v35 = vmax.f32 %v65_v21, %v81_v34  ;;  %vm42_vm4 = vcmp.eq.f32.partialorder %v41_v38, %v39_v37 }
 0x110   :  { %v92_v39 = vsel %vm42_vm4, 1, %v343_v10 }
 0x111   :  { %86 = vrot.lane.b32.xlu0 %v83_v35, %s345_s23  ;;  %v96_v40 = vrot.slane %v92_v39, %v394_v8 }
 0x112   :  { %88 = vrot.lane.b32.xlu1 %v82_v32, %s346_s24 }
 0x113   :  { %vm432_vm5 = vcmp.eq.s32.totalorder %v96_v40, 1 }
 0x115   :  { %90 = vrot.lane.b32.xlu0 %v83_v35, %s346_s24 }
 0x116   :  { %45 = vrot.lane.b32.xlu1 %v27_v2, %s339_s17 }
 0x180   :  { %v85_v41 = vpop.permute.xlu1 %84 }
 0x183   :  { %v87_v43 = vpop.permute.xlu0 %86 }
 0x184   :  { %v89_v44 = vpop.permute.xlu1 %88 }
 0x185   :  { %v98_v45 = vsel %vm432_vm5, %v85_v41, %v89_v44  ;;  %v349_v44 = vmov -0.25  }
 0x186   :  { %v100_v46 = vmax.f32 %v82_v32, %v98_v45 }
 0x187   :  { %v91_v47 = vpop.permute.xlu0 %90 }
 0x188   :  { %v99_v48 = vsel %vm432_vm5, %v87_v43, %v91_v47  ;;  %102 = vrot.lane.b32.xlu0 %v100_v46, %s339_s17  ;;  %v46_v52 = vpop.permute.xlu1 %45 }
 0x189   :  { %v101_v49 = vmax.f32 %v83_v35, %v99_v48  ;;  %vm47_vm6 = vcmp.eq.f32.partialorder %v46_v52, %v44_v51 }
 0x18a   :  { %v110_v53 = vsel %vm47_vm6, 1, %v343_v10 }
 0x18b   :  { %104 = vrot.lane.b32.xlu1 %v101_v49, %s339_s17  ;;  %v114_v54 = vrot.slane %v110_v53, %v394_v8 }
 0x18c   :  { %106 = vrot.lane.b32.xlu0 %v100_v46, %s347_s25 }
 0x18d   :  { %vm447_vm7 = vcmp.eq.s32.totalorder %v114_v54, 1 }
 0x18f   :  { %108 = vrot.lane.b32.xlu1 %v101_v49, %s347_s25 }
 0x1fa   :  { %v103_v55 = vpop.permute.xlu0 %102 }
 0x1fd   :  { %v105_v57 = vpop.permute.xlu1 %104 }
 0x1fe   :  { %v107_v58 = vpop.permute.xlu0 %106 }
 0x1ff   :  { %v116_v59 = vsel %vm447_vm7, %v103_v55, %v107_v58 }
 0x200   :  { %v118_v60 = vmax.f32 %v100_v46, %v116_v59 }
 0x201   :  { %v109_v61 = vpop.permute.xlu1 %108 }
 0x202   :  { %v117_v62 = vsel %vm447_vm7, %v105_v57, %v109_v61  ;;  %v120_v63 = vsub.f32 %v382_v4, %v118_v60 }
 0x203   :  { %v119_v0 = vmax.f32 %v101_v49, %v117_v62 }
 0x204   :  { %v122_v1 = vmul.f32 1.442695, %v120_v63 }
 0x205   :  { %v121_v2 = vsub.f32 %v380_v3, %v119_v0 }
 0x206   :  { %281 = vpow2.f32 %v122_v1 }
 0x207   :  { %v124_v5 = vmul.f32 1.442695, %v121_v2 }
 0x209   :  { %283 = vpow2.f32 %v124_v5 }
 0x210   :  { %v282_v6 = vpop.eup %281 }
 0x211   :  { %126 = vrot.lane.b32.xlu0 %v282_v6, %s340_s20 }
 0x213   :  { %v284_v7 = vpop.eup %283 }
 0x214   :  { %128 = vrot.lane.b32.xlu1 %v284_v7, %s340_s20 }
 0x215   :  { %130 = vrot.lane.b32.xlu0 %v282_v6, %s341_s0 }
 0x218   :  { %132 = vrot.lane.b32.xlu1 %v284_v7, %s341_s0 }
 0x283   :  { %v127_v8 = vpop.permute.xlu0 %126 }
 0x286   :  { %v129_v9 = vpop.permute.xlu1 %128 }
 0x287   :  { %v131_v4 = vpop.permute.xlu0 %130 }
 0x288   :  { %v134_v10 = vsel %vm398_vm1, %v127_v8, %v131_v4 }
 0x289   :  { %v136_v3 = vadd.f32 %v282_v6, %v134_v10 }
 0x28a   :  { %v133_v11 = vpop.permute.xlu1 %132 }
 0x28b   :  { %v135_v12 = vsel %vm398_vm1, %v129_v9, %v133_v11  ;;  %138 = vrot.lane.b32.xlu0 %v136_v3, %s342_s21 }
 0x28c   :  { %v137_v13 = vadd.f32 %v284_v7, %v135_v12 }
 0x28e   :  { %140 = vrot.lane.b32.xlu1 %v137_v13, %s342_s21 }
 0x28f   :  { %142 = vrot.lane.b32.xlu0 %v136_v3, %s344_s22 }
 0x292   :  { %144 = vrot.lane.b32.xlu1 %v137_v13, %s344_s22 }
 0x2fd   :  { %v139_v14 = vpop.permute.xlu0 %138 }
 0x300   :  { %v141_v16 = vpop.permute.xlu1 %140 }
 0x301   :  { %v143_v17 = vpop.permute.xlu0 %142 }
 0x302   :  { %v146_v18 = vsel %vm416_vm3, %v139_v14, %v143_v17 }
 0x303   :  { %v148_v19 = vadd.f32 %v146_v18, %v136_v3 }
 0x304   :  { %v145_v20 = vpop.permute.xlu1 %144 }
 0x305   :  { %v147_v15 = vsel %vm416_vm3, %v141_v16, %v145_v20  ;;  %150 = vrot.lane.b32.xlu0 %v148_v19, %s345_s23 }
 0x306   :  { %v149_v21 = vadd.f32 %v147_v15, %v137_v13 }
 0x308   :  { %152 = vrot.lane.b32.xlu1 %v149_v21, %s345_s23 }
 0x309   :  { %154 = vrot.lane.b32.xlu0 %v148_v19, %s346_s24 }
 0x30c   :  { %156 = vrot.lane.b32.xlu1 %v149_v21, %s346_s24 }
 0x377   :  { %v151_v22 = vpop.permute.xlu0 %150 }
 0x37a   :  { %v153_v23 = vpop.permute.xlu1 %152 }
 0x37b   :  { %v155_v24 = vpop.permute.xlu0 %154 }
 0x37c   :  { %v158_v25 = vsel %vm432_vm5, %v151_v22, %v155_v24 }
 0x37d   :  { %v160_v26 = vadd.f32 %v158_v25, %v148_v19 }
 0x37e   :  { %v157_v27 = vpop.permute.xlu1 %156 }
 0x37f   :  { %v159_v28 = vsel %vm432_vm5, %v153_v23, %v157_v27  ;;  %162 = vrot.lane.b32.xlu0 %v160_v26, %s339_s17 }
 0x380   :  { %v161_v29 = vadd.f32 %v159_v28, %v149_v21 }
 0x382   :  { %164 = vrot.lane.b32.xlu1 %v161_v29, %s339_s17 }
 0x383   :  { %166 = vrot.lane.b32.xlu0 %v160_v26, %s347_s25 }
 0x386   :  { %168 = vrot.lane.b32.xlu1 %v161_v29, %s347_s25 }
 0x3f1   :  { %v163_v30 = vpop.permute.xlu0 %162 }
 0x3f4   :  { %v165_v31 = vpop.permute.xlu1 %164 }
 0x3f5   :  { %v167_v32 = vpop.permute.xlu0 %166 }
 0x3f6   :  { %v170_v33 = vsel %vm447_vm7, %v163_v30, %v167_v32 }
 0x3f7   :  { %v172_v34 = vadd.f32 %v170_v33, %v160_v26 }
 0x3f8   :  { %v169_v35 = vpop.permute.xlu1 %168 }
 0x3f9   :  { %v171_v36 = vsel %vm447_vm7, %v165_v31, %v169_v35  ;;  %285 = vrcp.f32 %v172_v34 }
 0x3fa   :  { %v173_v37 = vadd.f32 %v171_v36, %v161_v29 }
 0x3fc   :  { %287 = vrcp.f32 %v173_v37 }
 0x403   :  { %v286_v38 = vpop.eup %285 }
 0x404   :  { %v176_v39 = vmul.f32 %v286_v38, %v282_v6 }
 0x406   :  { %v288_v40 = vpop.eup %287  ;;  %vm255_vm8 = vcmp.gt.f32.partialorder %v176_v39, -0.25  ;;  %vm257_vm9 = vcmp.gt.f32.partialorder %v176_v39, 0.0  ;;  %vm259_vm10 = vcmp.gt.f32.partialorder %v176_v39, 0.25  ;;  %vm261_vm14 = vcmp.gt.f32.partialorder %v176_v39, 0.5 }
 0x407   :  { %v177_v41 = vmul.f32 %v288_v40, %v284_v7  ;;  %v180_v43 = vsel %vm255_vm8, -0.25, %v348_v42  ;;  %v182_v45 = vsel %vm255_vm8, inf, %v349_v44  ;;  %vm263_vm0 = vcmp.gt.f32.partialorder %v176_v39, 0.75 }
 0x408   :  { %v186_v46 = vsel %vm257_vm9, 0.0, %v180_v43  ;;  %v188_v47 = vmin.f32 %v182_v45, 0.0  ;;  %vm265_vm2 = vcmp.gt.f32.partialorder %v176_v39, 1.0 }
 0x409   :  { %vm256_vm11 = vcmp.gt.f32.partialorder %v177_v41, -0.25  ;;  %vm258_vm12 = vcmp.gt.f32.partialorder %v177_v41, 0.0  ;;  %v194_v50 = vsel %vm259_vm10, 0.25, %v186_v46  ;;  %vm260_vm13 = vcmp.gt.f32.partialorder %v177_v41, 0.25 }
 0x40a   :  { %v181_v48 = vsel %vm256_vm11, -0.25, %v348_v42  ;;  %v183_v49 = vsel %vm256_vm11, inf, %v349_v44  ;;  %v190_v53 = vsel %vm257_vm9, %v182_v45, %v188_v47  ;;  %v202_v57 = vsel %vm261_vm14, 0.5, %v194_v50 }
 0x40b   :  { %v187_v51 = vsel %vm258_vm12, 0.0, %v181_v48  ;;  %v189_v52 = vmin.f32 %v183_v49, 0.0  ;;  %v196_v55 = vmin.f32 %v190_v53, 0.25  ;;  %vm262_vm15 = vcmp.gt.f32.partialorder %v177_v41, 0.5 }
 0x40c   :  { %v195_v54 = vsel %vm260_vm13, 0.25, %v187_v51  ;;  %v210_v63 = vsel %vm263_vm0, 0.75, %v202_v57  ;;  %vm264_vm1 = vcmp.gt.f32.partialorder %v177_v41, 0.75  ;;  %vm266_vm3 = vcmp.gt.f32.partialorder %v177_v41, 1.0 }
 0x40d   :  { %v191_v56 = vsel %vm258_vm12, %v183_v49, %v189_v52  ;;  %v198_v59 = vsel %vm259_vm10, %v190_v53, %v196_v55  ;;  %v203_v60 = vsel %vm262_vm15, 0.5, %v195_v54  ;;  %v218_v7 = vsel %vm265_vm2, 1.0, %v210_v63 }
 0x40e   :  { %v197_v58 = vmin.f32 %v191_v56, 0.25  ;;  %v204_v61 = vmin.f32 %v198_v59, 0.5  ;;  %v211_v2 = vsel %vm264_vm1, 0.75, %v203_v60  ;;  %v224_v11 = vsub.f32 %v176_v39, %v218_v7 }
 0x40f   :  { %v219_v4 = vsel %vm266_vm3, 1.0, %v211_v2 }
 0x410   :  { %v199_v62 = vsel %vm260_vm13, %v191_v56, %v197_v58  ;;  %v206_v1 = vsel %vm261_vm14, %v198_v59, %v204_v61  ;;  %v225_v14 = vsub.f32 %v177_v41, %v219_v4  ;;  %v226_v18 = vand.u32 2147483647, %v224_v11 }
 0x411   :  { %v205_v0 = vmin.f32 %v199_v62, 0.5  ;;  %v212_v5 = vmin.f32 %v206_v1, 0.75 }
 0x412   :  { %v227_v15 = vand.u32 2147483647, %v225_v14 }
 0x413   :  { %v207_v6 = vsel %vm262_vm15, %v199_v62, %v205_v0  ;;  %v214_v9 = vsel %vm263_vm0, %v206_v1, %v212_v5 }
 0x414   :  { %v213_v8 = vmin.f32 %v207_v6, 0.75  ;;  %v220_v10 = vmin.f32 %v214_v9, 1.0 }
 0x416   :  { %v215_v3 = vsel %vm264_vm1, %v207_v6, %v213_v8  ;;  %v222_v13 = vsel %vm265_vm2, %v214_v9, %v220_v10 }
 0x417   :  { %v221_v12 = vmin.f32 %v215_v3, 1.0  ;;  %v228_v16 = vsub.f32 %v176_v39, %v222_v13 }
 0x419   :  { %v223_v17 = vsel %vm266_vm3, %v215_v3, %v221_v12  ;;  %v230_v20 = vand.u32 2147483647, %v228_v16 }
 0x41a   :  { %v229_v19 = vsub.f32 %v177_v41, %v223_v17 }
 0x41b   :  { %vm232_vm4 = vcmp.le.f32.partialorder %v226_v18, %v230_v20 }
 0x41c   :  { %v231_v21 = vand.u32 2147483647, %v229_v19  ;;  %v234_v22 = vsel %vm232_vm4, %v218_v7, %v222_v13 }
 0x41d   :  { %236 = vst [vmem:[#allocation5] sm:$0xff] %v234_v22 }
 0x41e   :  { %vm233_vm5 = vcmp.le.f32.partialorder %v227_v15, %v231_v21 }
 0x41f   :  { %v235_v23 = vsel %vm233_vm5, %v219_v4, %v223_v17 }
 0x420   :  { %237 = vst [vmem:[#allocation5 + $0x8] sm:$0xff] %v235_v23 }
 0x421   :  { %322 = shalt.err (!%p319_p12)
}
 0x422   :  { %s323_s2 = scalar_lea.hbm %s507_s1, 256 }
 0x423   :  { %p324_p13 = scmp.ne.s32.totalorder %s507_s1, %s323_s2  ;;  %p327_p0 = scmp.lt.u32.totalorder %s323_s2, %s507_s1 }
 0x425   :  { %p329_p1 = pnand %p327_p0, %p324_p13 }
 0x427   :  { %332 = shalt.err (!%p329_p1)
}
 0x428   :  { %249 = dma.vmem_to_hbm [thread:$0]  %s244_s27, 256, %s507_s1, [#allocation4], %s338_s16, %s338_s16, %s339_s17  }
 0x429   :  { %335 = dma.done.wait [#allocation4], 256  }
 0x42a   :  { %336 = vsyncadd [#allocation4], 4294967040 }
 0x42b   :  { %253 = vsyncpa [#allocation3], 1 }
 0x42c   :  { %254 = vsyncpa [#allocation4], 1 }

</bundles_post_ra>
